<compile_context>
chip_gen: v7x
topology: tpu7x:2x2x1
jax: 0.10.0
libtpu: 0.0.40
codegen_flags: <defaults>
</compile_context>

<pallas_src>
import functools

import jax
import jax.numpy as jnp
from jax import lax
from jax.experimental import pallas as pl
from jax.experimental.pallas import tpu as pltpu


_LANE = 128
_BN_EPS = 1e-5
_NEG_BIG = -1e30     # used instead of -inf for masked (padded) class lanes
_MAX_TK = 4096       # K-tile ceiling; double-buffered working set stays ~MiB


def _round_up(x, m):
    return (x + m - 1) // m * m


def _pick_tk(d_pad):
    """Largest 128-multiple divisor of d_pad that is <= _MAX_TK."""
    n = d_pad // _LANE
    for cand in range(min(n, _MAX_TK // _LANE), 0, -1):
        if n % cand == 0:
            return cand * _LANE
    return _LANE


def _vmem_cap_bytes():
    """Generation-aware VMEM clamp: half of physical VMEM (>= 16 MiB)."""
    try:
        phys = int(pltpu.get_tpu_info().vmem_capacity_bytes)
    except Exception:
        phys = 64 << 20   # conservative (v7x-sized) fallback
    return max(phys // 2, 16 << 20)


def classifier_kernel(x_ref, w1_ref, b1_ref, gamma_ref, beta_ref, w2_ref, b2_ref,
                      o_ref, acc_ref, *, batch, num_classes):
    k = pl.program_id(0)

    @pl.when(k == 0)
    def _():
        acc_ref[...] = jnp.zeros_like(acc_ref)

    # ---- fc1 partial matmul over this K tile (bf16 in, f32 acc on MXU) ----
    acc_ref[...] += jnp.dot(x_ref[...], w1_ref[...],
                            preferred_element_type=jnp.float32)

    @pl.when(k == pl.num_programs(0) - 1)
    def _():
        # bias + ReLU
        h = jnp.maximum(acc_ref[...] + b1_ref[...], 0.0)             # (B, 128)

        # ---- BatchNorm1d, training-mode batch stats, biased variance ----
        # Two-pass (mean, then centered second moment) like PyTorch; clamp var.
        inv_b = 1.0 / batch
        mean = jnp.sum(h, axis=0, keepdims=True) * inv_b              # (1, 128)
        d = h - mean
        var = jnp.maximum(jnp.sum(d * d, axis=0, keepdims=True) * inv_b, 0.0)
        h_bn = d * lax.rsqrt(var + _BN_EPS)
        h_bn = h_bn * gamma_ref[...] + beta_ref[...]

        # ---- fc2 (MXU) ----
        logits = jnp.dot(h_bn, w2_ref[...], preferred_element_type=jnp.float32)
        logits = logits + b2_ref[...]                                 # (B, 128)

        # Mask padded class lanes so they contribute ~0 to the softmax denom.
        col = lax.broadcasted_iota(jnp.int32, logits.shape, 1)
        logits = jnp.where(col < num_classes, logits, _NEG_BIG)

        # ---- softmax over last dim (exp on EUP, approx reciprocal on EUP) ----
        m = jnp.max(logits, axis=-1, keepdims=True)
        e = jnp.exp(logits - m)
        denom = jnp.sum(e, axis=-1, keepdims=True)
        o_ref[...] = (e * pl.reciprocal(denom, approx=True)).astype(o_ref.dtype)


def prepare_params(params):
    """One-time cast + lane-dense padding of the classifier parameters.

    W1 (the big streamed weight) is stored as bf16; the small resident
    tensors stay f32.  Reuse the returned dict across forward calls so the
    per-call wrapper never re-reads/re-writes the weights.
    """
    w1, b1, gamma, beta, w2, b2 = params
    D, H = w1.shape
    C = w2.shape[1]
    D_pad = _round_up(D, _LANE)
    HP = _round_up(H, _LANE)
    CP = _round_up(C, _LANE)
    # Padded X cols x padded W1 rows contribute 0 to fc1; padded hidden lanes
    # stay 0 through ReLU/BN (gamma/beta pad = 0) and meet zero rows of W2;
    # padded class lanes are masked inside the kernel.
    w1p = jnp.pad(w1.astype(jnp.bfloat16), ((0, D_pad - D), (0, HP - H)))
    b1p = jnp.pad(b1.astype(jnp.float32).reshape(1, -1), ((0, 0), (0, HP - H)))
    gmp = jnp.pad(gamma.astype(jnp.float32).reshape(1, -1), ((0, 0), (0, HP - H)))
    btp = jnp.pad(beta.astype(jnp.float32).reshape(1, -1), ((0, 0), (0, HP - H)))
    w2p = jnp.pad(w2.astype(jnp.float32), ((0, HP - H), (0, CP - C)))
    b2p = jnp.pad(b2.astype(jnp.float32).reshape(1, -1), ((0, 0), (0, CP - C)))
    return {
        "w1": w1p, "b1": b1p, "gamma": gmp, "beta": btp, "w2": w2p, "b2": b2p,
        "in_features": D, "hidden": H, "num_classes": C,
        "D_pad": D_pad, "HP": HP, "CP": CP,
    }


def classifier_forward(x, prepped):
    """x: (B, C, H, W) or (B, D).  Returns (B, num_classes) softmax probs."""
    D = prepped["in_features"]
    D_pad, HP, CP = prepped["D_pad"], prepped["HP"], prepped["CP"]
    C = prepped["num_classes"]

    xf = x.reshape(x.shape[0], -1)                 # torch.flatten(x, 1)
    B = xf.shape[0]
    assert xf.shape[1] == D, "input feature dim does not match fc1"

    # Only per-call tensor work: cast X to bf16 and pad D to the next 128
    # multiple (no tk-multiple padding -> no extra HBM copy of X).
    xp = jnp.pad(xf.astype(jnp.bfloat16), ((0, 0), (0, D_pad - D)))

    tk = _pick_tk(D_pad)
    nk = D_pad // tk

    kernel = functools.partial(classifier_kernel, batch=float(B), num_classes=C)

    # VMEM estimate: double-buffered bf16 streams + double-buffered resident
    # f32 tiles (b1/gamma/beta, w2, b2, output) + the f32 accumulator scratch,
    # plus headroom, clamped to a generation-aware cap.
    need = (2 * (B * tk + tk * HP) * 2                      # x, w1 streams (bf16)
            + 2 * (3 * HP + HP * CP + CP + B * CP) * 4      # resident f32 tiles
            + B * HP * 4)                                   # accumulator scratch
    vmem_bytes = int(min(max(need + (4 << 20), 8 << 20), _vmem_cap_bytes()))

    cost = pl.CostEstimate(
        flops=int(2 * B * D_pad * HP + 2 * B * HP * CP),
        transcendentals=int(B * (CP + 2)),                  # exp + rsqrt/recip
        bytes_accessed=int((B * D_pad + D_pad * HP) * 2
                           + (HP * CP + 3 * HP + CP + B * CP) * 4),
    )

    out_padded = pl.pallas_call(
        kernel,
        out_shape=jax.ShapeDtypeStruct((B, CP), jnp.float32),
        grid_spec=pltpu.PrefetchScalarGridSpec(
            num_scalar_prefetch=0,
            grid=(nk,),
            in_specs=[
                pl.BlockSpec((B, tk), lambda k: (0, k)),     # x   (K-streamed)
                pl.BlockSpec((tk, HP), lambda k: (k, 0)),    # w1  (K-streamed)
                pl.BlockSpec((1, HP), lambda k: (0, 0)),     # b1
                pl.BlockSpec((1, HP), lambda k: (0, 0)),     # gamma
                pl.BlockSpec((1, HP), lambda k: (0, 0)),     # beta
                pl.BlockSpec((HP, CP), lambda k: (0, 0)),    # w2
                pl.BlockSpec((1, CP), lambda k: (0, 0)),     # b2
            ],
            out_specs=pl.BlockSpec((B, CP), lambda k: (0, 0)),
            scratch_shapes=[pltpu.VMEM((B, HP), jnp.float32)],
        ),
        compiler_params=pltpu.CompilerParams(
            dimension_semantics=("arbitrary",),   # K is a reduction axis
            vmem_limit_bytes=vmem_bytes,
        ),
        cost_estimate=cost,
    )(xp, prepped["w1"], prepped["b1"], prepped["gamma"], prepped["beta"],
      prepped["w2"], prepped["b2"])

    # Lane-dense (B, 128) store inside the kernel; slice back to real classes.
    return out_padded[:, :C]


def init_params(key, in_features, num_classes, hidden=100):
    """Deterministic synthetic init mimicking nn.Linear / nn.BatchNorm1d shapes."""
    k1, k2, k3, k4, k5, k6 = jax.random.split(key, 6)
    lim1 = 1.0 / jnp.sqrt(in_features)
    lim2 = 1.0 / jnp.sqrt(hidden)
    w1 = jax.random.uniform(k1, (in_features, hidden), jnp.float32, -lim1, lim1)
    b1 = jax.random.uniform(k2, (1, hidden), jnp.float32, -lim1, lim1)
    gamma = 1.0 + 0.1 * jax.random.normal(k3, (1, hidden), jnp.float32)
    beta = 0.1 * jax.random.normal(k4, (1, hidden), jnp.float32)
    w2 = jax.random.uniform(k5, (hidden, num_classes), jnp.float32, -lim2, lim2)
    b2 = jax.random.uniform(k6, (1, num_classes), jnp.float32, -lim2, lim2)
    return (w1, b1, gamma, beta, w2, b2)


def classifier_reference(x, params):
    """Pure-JAX f32 reference for verification (matches PyTorch forward)."""
    w1, b1, gamma, beta, w2, b2 = params
    xf = x.reshape(x.shape[0], -1).astype(jnp.float32)
    h = jnp.maximum(xf @ w1 + b1, 0.0)
    mean = jnp.mean(h, axis=0, keepdims=True)
    var = jnp.mean((h - mean) ** 2, axis=0, keepdims=True)
    h = (h - mean) / jnp.sqrt(var + _BN_EPS) * gamma + beta
    logits = h @ w2 + b2
    return jax.nn.softmax(logits, axis=-1)


if __name__ == "__main__":
    key = jax.random.PRNGKey(0)
    kx, kp = jax.random.split(key)

    # Small shapes: batch=8, channels=4, spatial=8x8 -> in_features = 256.
    B, Cc, Hs, Ws = 8, 4, 8, 8
    num_classes = 10
    in_features = Cc * Hs * Ws

    x = jax.random.normal(kx, (B, Cc, Hs, Ws), jnp.float32)
    params = init_params(kp, in_features, num_classes)

    prepped = prepare_params(params)       # one-time cast + pad (reused per call)
    out = classifier_forward(x, prepped)
    out = jax.block_until_ready(out)

    ref = classifier_reference(x, params)
    assert out.shape == (B, num_classes)
    # Tolerances account for bf16 streaming of X/W1 and the EUP approximate
    # reciprocal in the softmax (vs the pure-f32 reference).
    assert jnp.allclose(out, ref, atol=3e-2, rtol=3e-2), "mismatch vs reference"
    assert jnp.allclose(jnp.sum(out, axis=-1), 1.0, atol=5e-3), "rows not normalized"

    print("KERNEL_OK")
</pallas_src>

<mosaic_0001>
module attributes {stable_mosaic.version = 11 : i64} {
  func.func @classifier_kernel(%arg0: i32, %arg1: memref<8x256xbf16, #tpu.memory_space<vmem>>, %arg2: memref<256x128xbf16, #tpu.memory_space<vmem>>, %arg3: memref<1x128xf32, #tpu.memory_space<vmem>>, %arg4: memref<1x128xf32, #tpu.memory_space<vmem>>, %arg5: memref<1x128xf32, #tpu.memory_space<vmem>>, %arg6: memref<128x128xf32, #tpu.memory_space<vmem>>, %arg7: memref<1x128xf32, #tpu.memory_space<vmem>>, %arg8: memref<8x128xf32, #tpu.memory_space<vmem>>, %arg9: memref<8x128xf32, #tpu.memory_space<vmem>>) attributes {dimension_semantics = [#tpu.dimension_semantics<arbitrary>], iteration_bounds = array<i64: 1>, scalar_prefetch = 0 : i64, scratch_operands = 1 : i64, tpu.core_type = #tpu.core_type<tc>, window_params = [{transform_indices = @transform_0, window_bounds = array<i64: 8, 256>}, {transform_indices = @transform_1, window_bounds = array<i64: 256, 128>}, {pipeline_mode = #tpu.pipeline_mode<synchronous>, transform_indices = @transform_2, window_bounds = array<i64: 1, 128>}, {pipeline_mode = #tpu.pipeline_mode<synchronous>, transform_indices = @transform_3, window_bounds = array<i64: 1, 128>}, {pipeline_mode = #tpu.pipeline_mode<synchronous>, transform_indices = @transform_4, window_bounds = array<i64: 1, 128>}, {pipeline_mode = #tpu.pipeline_mode<synchronous>, transform_indices = @transform_5, window_bounds = array<i64: 128, 128>}, {pipeline_mode = #tpu.pipeline_mode<synchronous>, transform_indices = @transform_6, window_bounds = array<i64: 1, 128>}, {pipeline_mode = #tpu.pipeline_mode<synchronous>, transform_indices = @transform_7, window_bounds = array<i64: 8, 128>}]} {
    %c0_i32 = arith.constant 0 : i32
    %0 = arith.cmpi eq, %arg0, %c0_i32 : i32
    %1 = arith.extui %0 : i1 to i32
    %c0_i32_0 = arith.constant 0 : i32
    %2 = arith.cmpi ne, %1, %c0_i32_0 : i32
    scf.if %2 {
      %cst_10 = arith.constant 0.000000e+00 : f32
      %12 = vector.broadcast %cst_10 : f32 to vector<8x128xf32>
      %c0_11 = arith.constant 0 : index
      %c0_12 = arith.constant 0 : index
      %13 = vector.load %arg9[%c0_11, %c0_12] : memref<8x128xf32, #tpu.memory_space<vmem>>, vector<8x128xf32>
      tpu.vector_store %arg9[%c0_11, %c0_12], %12 {strides = array<i32>} : memref<8x128xf32, #tpu.memory_space<vmem>>, vector<8x128xf32>,
    } else {
    }
    %c0 = arith.constant 0 : index
    %c0_1 = arith.constant 0 : index
    %3 = vector.load %arg9[%c0, %c0_1] : memref<8x128xf32, #tpu.memory_space<vmem>>, vector<8x128xf32>
    %c0_2 = arith.constant 0 : index
    %c0_3 = arith.constant 0 : index
    %4 = vector.load %arg1[%c0_2, %c0_3] : memref<8x256xbf16, #tpu.memory_space<vmem>>, vector<8x256xbf16>
    %c0_4 = arith.constant 0 : index
    %c0_5 = arith.constant 0 : index
    %5 = vector.load %arg2[%c0_4, %c0_5] : memref<256x128xbf16, #tpu.memory_space<vmem>>, vector<256x128xbf16>
    %cst = arith.constant dense<0.000000e+00> : vector<8x128xf32>
    %6 = tpu.matmul %4, %5, %cst {dimension_numbers = #tpu.dot_dimension_numbers<[1], [0], [0], [1], [0, 0, 1, 1], [], []>} : vector<8x256xbf16>, vector<256x128xbf16>, vector<8x128xf32> -> vector<8x128xf32>
    %7 = arith.addf %3, %6 : vector<8x128xf32>
    %c0_6 = arith.constant 0 : index
    %c0_7 = arith.constant 0 : index
    %8 = vector.load %arg9[%c0_6, %c0_7] : memref<8x128xf32, #tpu.memory_space<vmem>>, vector<8x128xf32>
    tpu.vector_store %arg9[%c0_6, %c0_7], %7 {strides = array<i32>} : memref<8x128xf32, #tpu.memory_space<vmem>>, vector<8x128xf32>,
    %c0_i32_8 = arith.constant 0 : i32
    %9 = arith.cmpi eq, %arg0, %c0_i32_8 : i32
    %10 = arith.extui %9 : i1 to i32
    %c0_i32_9 = arith.constant 0 : i32
    %11 = arith.cmpi ne, %10, %c0_i32_9 : i32
    scf.if %11 {
      %c0_10 = arith.constant 0 : index
      %c0_11 = arith.constant 0 : index
      %12 = vector.load %arg9[%c0_10, %c0_11] : memref<8x128xf32, #tpu.memory_space<vmem>>, vector<8x128xf32>
      %c0_12 = arith.constant 0 : index
      %c0_13 = arith.constant 0 : index
      %13 = vector.load %arg3[%c0_12, %c0_13] : memref<1x128xf32, #tpu.memory_space<vmem>>, vector<1x128xf32>
      %14 = vector.broadcast %13 : vector<1x128xf32> to vector<8x128xf32>
      %15 = arith.addf %12, %14 : vector<8x128xf32>
      %cst_14 = arith.constant 0.000000e+00 : f32
      %16 = vector.broadcast %cst_14 : f32 to vector<8x128xf32>
      %17 = arith.maximumf %15, %16 : vector<8x128xf32>
      %cst_15 = arith.constant dense<0.000000e+00> : vector<128xf32>
      %18 = vector.multi_reduction <add>, %17, %cst_15 [0] : vector<8x128xf32> to vector<128xf32>
      %19 = vector.shape_cast %18 : vector<128xf32> to vector<1x128xf32>
      %cst_16 = arith.constant 1.250000e-01 : f32
      %20 = vector.broadcast %cst_16 : f32 to vector<1x128xf32>
      %21 = arith.mulf %19, %20 : vector<1x128xf32>
      %22 = vector.broadcast %21 : vector<1x128xf32> to vector<8x128xf32>
      %23 = arith.subf %17, %22 : vector<8x128xf32>
      %24 = arith.mulf %23, %23 : vector<8x128xf32>
      %cst_17 = arith.constant dense<0.000000e+00> : vector<128xf32>
      %25 = vector.multi_reduction <add>, %24, %cst_17 [0] : vector<8x128xf32> to vector<128xf32>
      %26 = vector.shape_cast %25 : vector<128xf32> to vector<1x128xf32>
      %cst_18 = arith.constant 1.250000e-01 : f32
      %27 = vector.broadcast %cst_18 : f32 to vector<1x128xf32>
      %28 = arith.mulf %26, %27 : vector<1x128xf32>
      %cst_19 = arith.constant 0.000000e+00 : f32
      %29 = vector.broadcast %cst_19 : f32 to vector<1x128xf32>
      %30 = arith.maximumf %28, %29 : vector<1x128xf32>
      %cst_20 = arith.constant 9.99999974E-6 : f32
      %31 = vector.broadcast %cst_20 : f32 to vector<1x128xf32>
      %32 = arith.addf %30, %31 : vector<1x128xf32>
      %33 = math.rsqrt %32 : vector<1x128xf32>
      %34 = vector.broadcast %33 : vector<1x128xf32> to vector<8x128xf32>
      %35 = arith.mulf %23, %34 : vector<8x128xf32>
      %c0_21 = arith.constant 0 : index
      %c0_22 = arith.constant 0 : index
      %36 = vector.load %arg4[%c0_21, %c0_22] : memref<1x128xf32, #tpu.memory_space<vmem>>, vector<1x128xf32>
      %37 = vector.broadcast %36 : vector<1x128xf32> to vector<8x128xf32>
      %38 = arith.mulf %35, %37 : vector<8x128xf32>
      %c0_23 = arith.constant 0 : index
      %c0_24 = arith.constant 0 : index
      %39 = vector.load %arg5[%c0_23, %c0_24] : memref<1x128xf32, #tpu.memory_space<vmem>>, vector<1x128xf32>
      %40 = vector.broadcast %39 : vector<1x128xf32> to vector<8x128xf32>
      %41 = arith.addf %38, %40 : vector<8x128xf32>
      %c0_25 = arith.constant 0 : index
      %c0_26 = arith.constant 0 : index
      %42 = vector.load %arg6[%c0_25, %c0_26] : memref<128x128xf32, #tpu.memory_space<vmem>>, vector<128x128xf32>
      %cst_27 = arith.constant dense<0.000000e+00> : vector<8x128xf32>
      %43 = tpu.matmul %41, %42, %cst_27 {dimension_numbers = #tpu.dot_dimension_numbers<[1], [0], [0], [1], [0, 0, 1, 1], [], []>} : vector<8x128xf32>, vector<128x128xf32>, vector<8x128xf32> -> vector<8x128xf32>
      %c0_28 = arith.constant 0 : index
      %c0_29 = arith.constant 0 : index
      %44 = vector.load %arg7[%c0_28, %c0_29] : memref<1x128xf32, #tpu.memory_space<vmem>>, vector<1x128xf32>
      %45 = vector.broadcast %44 : vector<1x128xf32> to vector<8x128xf32>
      %46 = arith.addf %43, %45 : vector<8x128xf32>
      %47 = tpu.iota {dimensions = array<i32: 1>} : vector<8x128xi32>
      %c10_i32 = arith.constant 10 : i32
      %48 = vector.broadcast %c10_i32 : i32 to vector<8x128xi32>
      %49 = arith.cmpi slt, %47, %48 : vector<8x128xi32>
      %cst_30 = arith.constant -1.000000e+30 : f32
      %50 = vector.broadcast %cst_30 : f32 to vector<8x128xf32>
      %51 = arith.select %49, %46, %50 : vector<8x128xi1>, vector<8x128xf32>
      %cst_31 = arith.constant dense<0xFF800000> : vector<8xf32>
      %52 = vector.multi_reduction <maximumf>, %51, %cst_31 [1] : vector<8x128xf32> to vector<8xf32>
      %53 = vector.shape_cast %52 : vector<8xf32> to vector<8x1xf32>
      %54 = vector.broadcast %53 : vector<8x1xf32> to vector<8x128xf32>
      %55 = arith.subf %51, %54 : vector<8x128xf32>
      %56 = math.exp %55 : vector<8x128xf32>
      %cst_32 = arith.constant dense<0.000000e+00> : vector<8xf32>
      %57 = vector.multi_reduction <add>, %56, %cst_32 [1] : vector<8x128xf32> to vector<8xf32>
      %58 = vector.shape_cast %57 : vector<8xf32> to vector<8x1xf32>
      %59 = tpu.reciprocal %58 {approx = true} : vector<8x1xf32> -> vector<8x1xf32>
      %60 = vector.broadcast %59 : vector<8x1xf32> to vector<8x128xf32>
      %61 = arith.mulf %56, %60 : vector<8x128xf32>
      %c0_33 = arith.constant 0 : index
      %c0_34 = arith.constant 0 : index
      %62 = vector.load %arg8[%c0_33, %c0_34] : memref<8x128xf32, #tpu.memory_space<vmem>>, vector<8x128xf32>
      tpu.vector_store %arg8[%c0_33, %c0_34], %61 {strides = array<i32>} : memref<8x128xf32, #tpu.memory_space<vmem>>, vector<8x128xf32>,
    } else {
    }
    return
  }
  func.func @transform_0(%arg0: i32) -> (i32, i32) {
    %c0_i32 = arith.constant 0 : i32
    %c0_i32_0 = arith.constant 0 : i32
    return %c0_i32, %arg0 : i32, i32
  }
  func.func @transform_1(%arg0: i32) -> (i32, i32) {
    %c0_i32 = arith.constant 0 : i32
    %c0_i32_0 = arith.constant 0 : i32
    return %arg0, %c0_i32 : i32, i32
  }
  func.func @transform_2(%arg0: i32) -> (i32, i32) {
    %c0_i32 = arith.constant 0 : i32
    %c0_i32_0 = arith.constant 0 : i32
    %c0_i32_1 = arith.constant 0 : i32
    return %c0_i32, %c0_i32_0 : i32, i32
  }
  func.func @transform_3(%arg0: i32) -> (i32, i32) {
    %c0_i32 = arith.constant 0 : i32
    %c0_i32_0 = arith.constant 0 : i32
    %c0_i32_1 = arith.constant 0 : i32
    return %c0_i32, %c0_i32_0 : i32, i32
  }
  func.func @transform_4(%arg0: i32) -> (i32, i32) {
    %c0_i32 = arith.constant 0 : i32
    %c0_i32_0 = arith.constant 0 : i32
    %c0_i32_1 = arith.constant 0 : i32
    return %c0_i32, %c0_i32_0 : i32, i32
  }
  func.func @transform_5(%arg0: i32) -> (i32, i32) {
    %c0_i32 = arith.constant 0 : i32
    %c0_i32_0 = arith.constant 0 : i32
    %c0_i32_1 = arith.constant 0 : i32
    return %c0_i32, %c0_i32_0 : i32, i32
  }
  func.func @transform_6(%arg0: i32) -> (i32, i32) {
    %c0_i32 = arith.constant 0 : i32
    %c0_i32_0 = arith.constant 0 : i32
    %c0_i32_1 = arith.constant 0 : i32
    return %c0_i32, %c0_i32_0 : i32, i32
  }
  func.func @transform_7(%arg0: i32) -> (i32, i32) {
    %c0_i32 = arith.constant 0 : i32
    %c0_i32_0 = arith.constant 0 : i32
    %c0_i32_1 = arith.constant 0 : i32
    return %c0_i32, %c0_i32_0 : i32, i32
  }
}

</mosaic_0001>

<bundles_post_ra>
// kernel: tpu_custom_call.1
= control target key start
LH: loop header
LB: loop body
LE: loop exit
PB: predicated region body
PF: predicated region fallthrough
CT: control target
= control target key end

     0   :  { %12 = vsyncpa [#allocation4], 0  ;;  %s783_s0 = inlined_call_operand.hbm [shape: bf16[8,256], index: 0, kind: input, shape index: {}]   ;;  %s784_s1 = inlined_call_operand.hbm [shape: bf16[256,128], index: 1, kind: input, shape index: {}]   ;;  %s785_s2 = inlined_call_operand.vmem [shape: f32[1,128], index: 2, kind: input, shape index: {}]   ;;  %s786_s3 = inlined_call_operand.vmem [shape: f32[1,128], index: 3, kind: input, shape index: {}]   ;;  %s787_s4 = inlined_call_operand.vmem [shape: f32[1,128], index: 4, kind: input, shape index: {}]   ;;  %s788_s5 = inlined_call_operand.hbm [shape: f32[128,128], index: 5, kind: input, shape index: {}]   ;;  %s789_s6 = inlined_call_operand.vmem [shape: f32[1,128], index: 6, kind: input, shape index: {}]   ;;  %s790_s7 = inlined_call_operand.hbm [shape: f32[8,128], index: 7, kind: output, shape index: {}]  }
   0x1   :  { %13 = vsyncpa [#allocation7], 0 }
   0x2   :  { %14 = vsyncpa [#allocation5], 0  ;;  %s672_s24 = smov [#allocation6]   ;;  %s578_s28 = scalar_lea.hbm %s784_s1, 2048 }
   0x3   :  { %s30_s25 = sshll.u32 %s672_s24, 4  ;;  %p579_p0 = scmp.ne.s32.totalorder %s784_s1, %s578_s28  ;;  %s31_s25 = int_to_ptr.vmem [resolvable:$true] %s30_s25 }
   0x4   :  { %p582_p1 = scmp.lt.u32.totalorder %s578_s28, %s784_s1 }
   0x6   :  { %p584_p2 = pnand %p582_p1, %p579_p0 }
   0x8   :  { %587 = shalt.err (!%p584_p2)
}
   0x9   :  { %s588_s10 = scalar_lea.vmem %s31_s25, 2048  ;;  %p593_p4 = scmp.lt.s32.totalorder %s31_s25, %s31_s25 }
   0xa   :  { %p589_p3 = scmp.ne.s32.totalorder %s31_s25, %s588_s10  ;;  %p594_p5 = scmp.lt.s32.totalorder %s588_s10, %s588_s10 }
   0xc   :  { %p595_p6 = por %p594_p5, %p593_p4 }
   0xe   :  { %p596_p7 = pnand %p595_p6, %p589_p3 }
  0x10   :  { %599 = shalt.err (!%p596_p7)
}
  0x11   :  { %s673_s11 = smov 64   ;;  %s674_s12 = smov 4  }
  0x12   :  { %36 = dma.hbm_to_vmem [thread:$0]  %s784_s1, 2048, %s31_s25, [#allocation7], %s673_s11, %s673_s11, %s674_s12  }
  0x13   :  { %s675_s15 = smov [#allocation3]   ;;  %s676_s17 = smov [#allocation8]  }
  0x14   :  { %s21_s16 = sshll.u32 %s675_s15, 4  ;;  %s48_s18 = sshll.u32 %s676_s17, 4  ;;  %s22_s16 = int_to_ptr.vmem [resolvable:$true] %s21_s16  ;;  %s49_s18 = int_to_ptr.vmem [resolvable:$true] %s48_s18 }
  0x15   :  { %s600_s21 = scalar_lea.hbm %s783_s0, 128 }
  0x16   :  { %p601_p8 = scmp.ne.s32.totalorder %s783_s0, %s600_s21  ;;  %p604_p9 = scmp.lt.u32.totalorder %s600_s21, %s783_s0 }
  0x18   :  { %p606_p10 = pnand %p604_p9, %p601_p8 }
  0x1a   :  { %609 = shalt.err (!%p606_p10)
}
  0x1b   :  { %s610_s1 = scalar_lea.vmem %s22_s16, 128  ;;  %p615_p12 = scmp.lt.s32.totalorder %s22_s16, %s22_s16 }
  0x1c   :  { %p611_p11 = scmp.ne.s32.totalorder %s22_s16, %s610_s1  ;;  %p616_p13 = scmp.lt.s32.totalorder %s610_s1, %s610_s1 }
  0x1e   :  { %p617_p0 = por %p616_p13, %p615_p12 }
  0x20   :  { %p618_p1 = pnand %p617_p0, %p611_p11 }
  0x22   :  { %621 = shalt.err (!%p618_p1)
}
  0x23   :  { %24 = dma.hbm_to_vmem [thread:$0]  %s783_s0, 128, %s22_s16, [#allocation4]  }
  0x24   :  { %s622_s30 = scalar_lea.hbm %s788_s5, 2048 }
  0x25   :  { %p623_p2 = scmp.ne.s32.totalorder %s788_s5, %s622_s30  ;;  %p626_p3 = scmp.lt.u32.totalorder %s622_s30, %s788_s5 }
  0x27   :  { %p628_p4 = pnand %p626_p3, %p623_p2 }
  0x29   :  { %631 = shalt.err (!%p628_p4)
}
  0x2a   :  { %s632_s12 = scalar_lea.vmem %s49_s18, 2048  ;;  %p637_p6 = scmp.lt.s32.totalorder %s49_s18, %s49_s18 }
  0x2b   :  { %p633_p5 = scmp.ne.s32.totalorder %s49_s18, %s632_s12  ;;  %p638_p7 = scmp.lt.s32.totalorder %s632_s12, %s632_s12 }
  0x2d   :  { %p639_p8 = por %p638_p7, %p637_p6 }
  0x2f   :  { %p640_p9 = pnand %p639_p8, %p633_p5 }
  0x31   :  { %643 = shalt.err (!%p640_p9)
}
  0x32   :  { %s677_s0 = smov 128   ;;  %s678_s13 = smov 8  }
  0x33   :  { %54 = dma.hbm_to_vmem [thread:$0]  %s788_s5, 2048, %s49_s18, [#allocation7], %s677_s0, %s677_s0, %s678_s13  }
  0x34   :  { %666 = dma.done.wait [#allocation4], 128  }
  0x35   :  { %667 = vsyncadd [#allocation4], 4294967168 }
  0x36   :  { %668 = dma.done.wait [#allocation7], 4096  }
  0x37   :  { %669 = vsyncadd [#allocation7], 4294963200  ;;  %v554_v0 = vld [vmem:[#allocation6 + $0x40] sm:$0xff]   ;;  %v556_v2 = vld [vmem:[#allocation6 + $0x48] sm:$0xff]   ;;  %v679_v22 = vmov 0.0|0.0   ;;  %vm680_vm0 = vmmov 0  }
  0x38   :  { %v555_v1 = vld [vmem:[#allocation6] sm:$0xff]   ;;  %445 = vmatprep.subr.bf16.mxu0 %v554_v0  ;;  %v557_v3 = vld [vmem:[#allocation6 + $0x8] sm:$0xff]   ;;  %v558_v4 = vld [vmem:[#allocation6 + $0x50] sm:$0xff]   ;;  %519 = vmatprep.subr.bf16.mxu1 %v679_v22  ;;  %v681_v37 = vmov 0.0  }
  0x39   :  { %446 = vmatpush3.bf16.msra.mxu0 %v555_v1  ;;  %v559_v5 = vld [vmem:[#allocation6 + $0x10] sm:$0xff]   ;;  %v560_v6 = vld [vmem:[#allocation6 + $0x58] sm:$0xff]   ;;  %v562_v8 = vld [vmem:[#allocation6 + $0x60] sm:$0xff]   ;;  %516 = vmatprep.mubr.msk.f32.mxu1 %vm680_vm0, %v681_v37 }
  0x3a   :  { %447 = vmatprep.subr.bf16.mxu0 %v556_v2  ;;  %v561_v7 = vld [vmem:[#allocation6 + $0x18] sm:$0xff]   ;;  %v563_v9 = vld [vmem:[#allocation6 + $0x20] sm:$0xff]   ;;  %v564_v10 = vld [vmem:[#allocation6 + $0x68] sm:$0xff]  }
  0x3b   :  { %v73_v11 = vld [vmem:[#allocation3] sm:$0xff]  ;;  %v565_v13 = vld [vmem:[#allocation6 + $0x28] sm:$0xff]   ;;  %v566_v14 = vld [vmem:[#allocation6 + $0x70] sm:$0xff]  }
  0x3c   :  { %v424_v12 = vcombine.high %v73_v11, %v73_v11  ;;  %v567_v15 = vld [vmem:[#allocation6 + $0x30] sm:$0xff]   ;;  %v568_v16 = vld [vmem:[#allocation6 + $0x78] sm:$0xff]   ;;  %v423_v18 = vcombine.low %v73_v11, %v73_v11  ;;  %v300_v19 = vld [vmem:[#allocation8] sm:$0xff] }
  0x3d   :  { %448 = vmatpush3.bf16.msra.mxu0 %v557_v3  ;;  %v569_v17 = vld [vmem:[#allocation6 + $0x38] sm:$0xff]   ;;  %v301_v20 = vld [vmem:[#allocation8 + $0x8] sm:$0xff]  ;;  %v302_v23 = vld [vmem:[#allocation8 + $0x10] sm:$0xff] }
  0x3e   :  { %449 = vmatprep.subr.bf16.mxu0 %v558_v4  ;;  %241 = vmatprep.mubr.bf16.mxu0 %v424_v12  ;;  %v520_v21 = vpack.c.bf16 %v301_v20, %v300_v19  ;;  %v303_v24 = vld [vmem:[#allocation8 + $0x18] sm:$0xff]  ;;  %v304_v26 = vld [vmem:[#allocation8 + $0x20] sm:$0xff]  ;;  %v305_v27 = vld [vmem:[#allocation8 + $0x28] sm:$0xff] }
  0x3f   :  { %v523_v25 = vpack.c.bf16 %v303_v24, %v302_v23  ;;  %v526_v28 = vpack.c.bf16 %v305_v27, %v304_v26  ;;  %v306_v29 = vld [vmem:[#allocation8 + $0x30] sm:$0xff]  ;;  %v307_v30 = vld [vmem:[#allocation8 + $0x38] sm:$0xff]  ;;  %v308_v32 = vld [vmem:[#allocation8 + $0x40] sm:$0xff] }
  0x40   :  { %521 = vmatpush3.bf16.msra.mxu1 %v520_v21  ;;  %v529_v31 = vpack.c.bf16 %v307_v30, %v306_v29  ;;  %v309_v33 = vld [vmem:[#allocation8 + $0x48] sm:$0xff]  ;;  %v310_v35 = vld [vmem:[#allocation8 + $0x50] sm:$0xff]  ;;  %v311_v36 = vld [vmem:[#allocation8 + $0x58] sm:$0xff] }
  0x41   :  { %450 = vmatpush3.bf16.msra.mxu0 %v559_v5  ;;  %522 = vmatprep.subr.bf16.mxu1 %v679_v22  ;;  %v532_v34 = vpack.c.bf16 %v309_v33, %v308_v32  ;;  %v535_v38 = vpack.c.bf16 %v311_v36, %v310_v35  ;;  %v312_v39 = vld [vmem:[#allocation8 + $0x60] sm:$0xff]  ;;  %v313_v40 = vld [vmem:[#allocation8 + $0x68] sm:$0xff]  ;;  %v314_v42 = vld [vmem:[#allocation8 + $0x70] sm:$0xff] }
  0x42   :  { %451 = vmatprep.subr.bf16.mxu0 %v560_v6  ;;  %v538_v41 = vpack.c.bf16 %v313_v40, %v312_v39  ;;  %v315_v43 = vld [vmem:[#allocation8 + $0x78] sm:$0xff] }
  0x43   :  { %v541_v44 = vpack.c.bf16 %v315_v43, %v314_v42  ;;  %v441_v47 = vld [vmem:[%s785_s2] ss:$0 sm:$0xff] }
  0x44   :  { %524 = vmatpush3.bf16.msra.mxu1 %v523_v25 }
  0x45   :  { %452 = vmatpush3.bf16.msra.mxu0 %v561_v7  ;;  %525 = vmatprep.subr.bf16.mxu1 %v679_v22 }
  0x46   :  { %453 = vmatprep.subr.bf16.mxu0 %v562_v8  ;;  %v442_v8 = vld [vmem:[%s786_s3] ss:$0 sm:$0xff]  ;;  %s682_s3 = smov [#allocation9]  }
  0x48   :  { %527 = vmatpush3.bf16.msra.mxu1 %v526_v28 }
  0x49   :  { %454 = vmatpush3.bf16.msra.mxu0 %v563_v9  ;;  %528 = vmatprep.subr.bf16.mxu1 %v679_v22 }
  0x4a   :  { %455 = vmatprep.subr.bf16.mxu0 %v564_v10  ;;  %v443_v10 = vld [vmem:[%s787_s4] ss:$0 sm:$0xff]  ;;  %s413_s4 = sshll.u32 %s682_s3, 4  ;;  %s414_s4 = int_to_ptr.vmem [resolvable:$true] %s413_s4 }
  0x4b   :  { %p649_p11 = scmp.lt.s32.totalorder %s414_s4, %s414_s4 }
  0x4c   :  { %530 = vmatpush3.bf16.msra.mxu1 %v529_v31 }
  0x4d   :  { %456 = vmatpush3.bf16.msra.mxu0 %v565_v13  ;;  %531 = vmatprep.subr.bf16.mxu1 %v679_v22  ;;  %v393_v13 = vlaneseq }
  0x4e   :  { %457 = vmatprep.subr.bf16.mxu0 %v566_v14 }
  0x4f   :  { %v394_v14 = vand.u32 127, %v393_v13 }
  0x50   :  { %533 = vmatpush3.bf16.msra.mxu1 %v532_v34 }
  0x51   :  { %458 = vmatpush3.bf16.msra.mxu0 %v567_v15  ;;  %534 = vmatprep.subr.bf16.mxu1 %v679_v22  ;;  %v444_v15 = vld [vmem:[%s789_s6] ss:$0 sm:$0xff]  ;;  %vm395_vm1 = vcmp.lt.s32.totalorder %v394_v14, 10  ;;  %s644_s6 = scalar_lea.vmem %s414_s4, 128 }
  0x52   :  { %459 = vmatprep.subr.bf16.mxu0 %v568_v16  ;;  %p645_p10 = scmp.ne.s32.totalorder %s414_s4, %s644_s6  ;;  %p650_p12 = scmp.lt.s32.totalorder %s644_s6, %s644_s6 }
  0x54   :  { %536 = vmatpush3.bf16.msra.mxu1 %v535_v38  ;;  %p651_p13 = por %p650_p12, %p649_p11 }
  0x55   :  { %460 = vmatpush3.bf16.msra.mxu0 %v569_v17  ;;  %537 = vmatprep.subr.bf16.mxu1 %v679_v22 }
  0x56   :  { %p652_p0 = pnand %p651_p13, %p645_p10 }
  0x58   :  { %242 = vmatmul.mubr.bf16.vlgmr.msra.gmra.mrb[0].mxu0 %v423_v18  ;;  %539 = vmatpush3.bf16.msra.mxu1 %v538_v41 }
  0x59   :  { %540 = vmatprep.subr.bf16.mxu1 %v679_v22 }
  0x5c   :  { %542 = vmatpush3.bf16.msra.mxu1 %v541_v44 }
 0x12b   :  { %v461_v45 = vpop.f32.mrb[0].mxu0 }
 0x12c   :  { %v462_v46 = vpop.f32.mrb[1].mxu0 }
 0x12d   :  { %v463_v48 = vadd.f32 %v462_v46, %v461_v45  ;;  %v464_v49 = vpop.f32.mrb[2].mxu0 }
 0x12e   :  { %v465_v50 = vpop.f32.mrb[3].mxu0 }
 0x12f   :  { %v262_v51 = vadd.f32 %v463_v48, %v441_v47 }
 0x131   :  { %v263_v52 = vmax.f32 %v262_v51, 0.0 }
 0x133   :  { %v264_v53 = vrot.slane %v263_v52, 4 }
 0x135   :  { %v265_v54 = vadd.f32 %v264_v53, %v263_v52 }
 0x137   :  { %v266_v55 = vrot.slane %v265_v54, 2 }
 0x139   :  { %v267_v56 = vadd.f32 %v266_v55, %v265_v54 }
 0x13b   :  { %v268_v57 = vrot.slane %v267_v56, 1 }
 0x13d   :  { %v269_v58 = vadd.f32 %v268_v57, %v267_v56 }
 0x13f   :  { %v270_v59 = vmul.f32 0.125, %v269_v58 }
 0x141   :  { %v271_v60 = vsub.f32 %v263_v52, %v270_v59 }
 0x143   :  { %v272_v61 = vmul.f32 %v271_v60, %v271_v60 }
 0x145   :  { %v273_v62 = vrot.slane %v272_v61, 4 }
 0x147   :  { %v274_v63 = vadd.f32 %v273_v62, %v272_v61 }
 0x149   :  { %v275_v0 = vrot.slane %v274_v63, 2 }
 0x14b   :  { %v276_v1 = vadd.f32 %v275_v0, %v274_v63 }
 0x14d   :  { %v277_v2 = vrot.slane %v276_v1, 1 }
 0x14f   :  { %v278_v3 = vadd.f32 %v277_v2, %v276_v1 }
 0x151   :  { %v279_v4 = vmul.f32 0.125, %v278_v3 }
 0x153   :  { %v280_v5 = vmax.f32 %v279_v4, 0.0 }
 0x155   :  { %v281_v6 = vadd.f32 1e-05, %v280_v5 }
 0x157   :  { %572 = vrsqrt.f32 %v281_v6 }
 0x161   :  { %v573_v7 = vpop.eup %572 }
 0x162   :  { %v283_v9 = vmul.f32 %v573_v7, %v271_v60 }
 0x164   :  { %v291_v11 = vmul.f32 %v442_v8, %v283_v9 }
 0x166   :  { %v299_v12 = vadd.f32 %v443_v10, %v291_v11 }
 0x168   :  { %517 = vmatmul.mubr.f32.vlgmr.msra.gmra.mrb[0].mxu1 %v299_v12 }
 0x23b   :  { %v389_v16 = vpop.f32.mrb[0].mxu1 }
 0x23c   :  { %v390_v17 = vadd.f32 %v444_v15, %v389_v16  ;;  %v518_v18 = vpop.f32.mrb[1].mxu1 }
 0x23e   :  { %v396_v19 = vsel %vm395_vm1, %v390_v17, -1e+30 }
 0x23f   :  { %397 = vmax.xlane.f32.xlu0 %v396_v19 }
 0x2cc   :  { %v398_v20 = vpop.xlane.xlu0 %397 }
 0x2cd   :  { %v399_v21 = vsub.f32 %v396_v19, %v398_v20 }
 0x2cf   :  { %v400_v22 = vmul.f32 1.442695, %v399_v21 }
 0x2d1   :  { %574 = vpow2.f32 %v400_v22 }
 0x2db   :  { %v575_v23 = vpop.eup %574 }
 0x2dc   :  { %402 = vadd.xlane.f32.xlu0 %v575_v23 }
 0x369   :  { %v403_v24 = vpop.xlane.xlu0 %402 }
 0x36a   :  { %576 = vrcp.f32 %v403_v24 }
 0x374   :  { %v577_v25 = vpop.eup %576 }
 0x375   :  { %v405_v26 = vmul.f32 %v577_v25, %v575_v23 }
 0x377   :  { %406 = vst [vmem:[#allocation9] sm:$0xff] %v405_v26 }
 0x378   :  { %655 = shalt.err (!%p652_p0)
}
 0x379   :  { %s656_s24 = scalar_lea.hbm %s790_s7, 128 }
 0x37a   :  { %p657_p1 = scmp.ne.s32.totalorder %s790_s7, %s656_s24  ;;  %p660_p2 = scmp.lt.u32.totalorder %s656_s24, %s790_s7 }
 0x37c   :  { %p662_p3 = pnand %p660_p2, %p657_p1 }
 0x37e   :  { %665 = shalt.err (!%p662_p3)
}
 0x37f   :  { %416 = dma.vmem_to_hbm [thread:$0]  %s414_s4, 128, %s790_s7, [#allocation5]  }
 0x380   :  { %670 = dma.done.wait [#allocation5], 128  }
 0x381   :  { %671 = vsyncadd [#allocation5], 4294967168 }
 0x382   :  { %420 = vsyncpa [#allocation4], 1 }
 0x383   :  { %421 = vsyncpa [#allocation7], 1 }
 0x384   :  { %422 = vsyncpa [#allocation5], 1 }

</bundles_post_ra>
